<compile_context>
chip_gen: v7x
topology: tpu7x:2x2x1
jax: 0.10.0
libtpu: 0.0.40
codegen_flags: <defaults>
</compile_context>

<pallas_src>
import functools

import jax
import jax.numpy as jnp
from jax.experimental import pallas as pl
from jax.experimental.pallas import tpu as pltpu


def _tv_kernel(x_ref, o_ref, acc_h_ref, acc_w_ref, *, H):
    """Processes one (Rc, W) row-chunk of one image (rows = flattened C*H axis).

    Grid = (B, n_chunks).  The chunk axis (axis 1) is the sequential
    ("arbitrary") reduction axis; the small f32 accumulators are re-initialised
    at k == 0 for every batch element, which is correct for b-outer / k-inner
    iteration and under megacore splitting of the *batch* axis.  It would break
    if the chunk axis were ever marked "parallel".
    """
    k = pl.program_id(1)
    Rc, W = x_ref.shape

    @pl.when(k == 0)
    def _init():
        acc_h_ref[...] = jnp.zeros_like(acc_h_ref)
        acc_w_ref[...] = jnp.zeros_like(acc_w_ref)

    # Per-chunk upcast (no-op for f32 inputs).
    xf = x_ref[...].astype(jnp.float32)                       # (Rc, W)

    # ---- width (horizontal) diffs: every adjacent column pair is valid ------
    if W > 1:
        d_w = jnp.abs(xf[:, 1:] - xf[:, :-1])                 # (Rc, W-1)
        acc_w_ref[...] += jnp.sum(d_w, axis=0, keepdims=True)  # (1, W-1)

    # ---- height (vertical) diffs --------------------------------------------
    # Rc is always a whole multiple of H, so a chunk never straddles a channel
    # boundary (no carry / halo DMA).  Inside the chunk, drop pairs whose later
    # row starts a new channel; when Rc == H there is nothing to mask.
    if Rc > 1:
        d_h = jnp.abs(xf[1:, :] - xf[:-1, :])                 # (Rc-1, W)
        if Rc > H:
            nxt = 1 + jax.lax.broadcasted_iota(jnp.int32, (Rc - 1, W), 0)
            d_h = jnp.where((nxt % H) != 0, d_h, 0.0)
        acc_h_ref[...] += jnp.sum(d_h, axis=0, keepdims=True)  # (1, W)

    @pl.when(k == pl.num_programs(1) - 1)
    def _finalize():
        total = jnp.sum(acc_h_ref[...]) + jnp.sum(acc_w_ref[...])
        o_ref[...] = jnp.full(o_ref.shape, total, dtype=o_ref.dtype)


def _pick_chunk_rows(C, H, W, itemsize):
    """Rows per chunk along the flattened C*H axis.

    Always a whole number of H-row channels (chunks never straddle a channel
    boundary) and, when chunking, a multiple of 8 so the block shape satisfies
    the (8, 128) sublane tiling rule.  Targets ~4 MiB per input buffer (the
    auto-pipeliner double-buffers it).
    """
    target_bytes = 4 * 1024 * 1024
    R = C * H
    cap = max(1, target_bytes // max(1, W * itemsize))
    if R <= cap:
        return R                                  # one chunk per image
    best = None
    for m in range(C, 0, -1):
        rc = m * H
        if C % m == 0 and rc <= cap and rc % 8 == 0:
            best = rc
            break
    if best is None:
        # TODO(synk): H not a multiple of 8 (or one channel alone exceeds the
        # target) — fall back to one chunk per image instead of adding a
        # halo/carry path for misaligned chunks.
        return R
    return best


def tv_loss(x, *, chunk_rows=None):
    """Total variation loss, semantics identical to the PyTorch TVLoss.forward.

    x: (B, C, H, W) array.  Returns a float32 scalar
       2 * mean_b( sum|height diffs| + sum|width diffs| ).
    """
    assert x.ndim == 4, x.shape
    B, C, H, W = x.shape
    R = C * H
    if chunk_rows is None:
        Rc = _pick_chunk_rows(C, H, W, jnp.dtype(x.dtype).itemsize)
    else:
        Rc = int(chunk_rows)
        assert R % Rc == 0 and Rc % H == 0 and (Rc == R or Rc % 8 == 0), (Rc, R, H)
    n_chunks = R // Rc

    x2 = x.reshape(B, R, W)                       # free reshape: lane axis stays W

    kernel = functools.partial(_tv_kernel, H=H)
    out = pl.pallas_call(
        kernel,
        # Lane/sublane-aligned (8,128) output tile per batch element; the
        # per-image scalar is broadcast into it and read back as out[:, 0, 0].
        out_shape=jax.ShapeDtypeStruct((B, 8, 128), jnp.float32),
        grid_spec=pltpu.PrefetchScalarGridSpec(
            num_scalar_prefetch=0,
            grid=(B, n_chunks),
            in_specs=[pl.BlockSpec((None, Rc, W), lambda b, k: (b, k, 0))],
            out_specs=pl.BlockSpec((None, 8, 128), lambda b, k: (b, 0, 0)),
            scratch_shapes=[
                pltpu.VMEM((1, W), jnp.float32),               # height partials
                pltpu.VMEM((1, max(W - 1, 1)), jnp.float32),   # width partials
            ],
        ),
        compiler_params=pltpu.CompilerParams(
            dimension_semantics=("parallel", "arbitrary"),
            vmem_limit_bytes=48 * 1024 * 1024,
        ),
    )(x2)
    per_batch = out[:, 0, 0]
    # Tiny glue matching torch.mean + `2 * tv_loss`.
    return 2.0 * jnp.mean(per_batch)


def tv_loss_ref(x):
    """Pure-JAX reference mirroring the PyTorch code."""
    xf = x.astype(jnp.float32)
    tv_h = jnp.sum(jnp.abs(xf[:, :, 1:, :] - xf[:, :, :-1, :]), axis=(1, 2, 3))
    tv_w = jnp.sum(jnp.abs(xf[:, :, :, 1:] - xf[:, :, :, :-1]), axis=(1, 2, 3))
    return 2.0 * jnp.mean(tv_h + tv_w)


if __name__ == "__main__":
    key = jax.random.PRNGKey(0)
    B, C, H, W = 2, 4, 16, 16
    x = jax.random.normal(key, (B, C, H, W), dtype=jnp.float32)

    ref = jax.block_until_ready(tv_loss_ref(x))

    # Default path (single chunk per image).
    out = jax.block_until_ready(tv_loss(x))
    assert jnp.allclose(out, ref, rtol=1e-5, atol=1e-4), (out, ref)

    # Also exercise the chunked paths: multi-channel chunk (with the in-chunk
    # channel-boundary mask) and single-channel chunk (no mask at all).
    out32 = jax.block_until_ready(tv_loss(x, chunk_rows=32))
    assert jnp.allclose(out32, ref, rtol=1e-5, atol=1e-4), (out32, ref)
    out16 = jax.block_until_ready(tv_loss(x, chunk_rows=16))
    assert jnp.allclose(out16, ref, rtol=1e-5, atol=1e-4), (out16, ref)

    print("KERNEL_OK")
</pallas_src>

<mosaic_0001>
module attributes {stable_mosaic.version = 11 : i64} {
  func.func @_tv_kernel(%arg0: i32, %arg1: i32, %arg2: memref<1x64x16xf32, #tpu.memory_space<vmem>>, %arg3: memref<1x8x128xf32, #tpu.memory_space<vmem>>, %arg4: memref<1x16xf32, #tpu.memory_space<vmem>>, %arg5: memref<1x15xf32, #tpu.memory_space<vmem>>) attributes {dimension_semantics = [#tpu.dimension_semantics<parallel>, #tpu.dimension_semantics<arbitrary>], iteration_bounds = array<i64: 2, 1>, scalar_prefetch = 0 : i64, scratch_operands = 2 : i64, tpu.core_type = #tpu.core_type<tc>, window_params = [{transform_indices = @transform_0, window_bounds = array<i64: 1, 64, 16>}, {transform_indices = @transform_1, window_bounds = array<i64: 1, 8, 128>}]} {
    %c0_i32 = arith.constant 0 : i32
    %0 = arith.cmpi eq, %arg1, %c0_i32 : i32
    %1 = arith.extui %0 : i1 to i32
    %c0_i32_0 = arith.constant 0 : i32
    %2 = arith.cmpi ne, %1, %c0_i32_0 : i32
    scf.if %2 {
      %cst_21 = arith.constant 0.000000e+00 : f32
      %49 = vector.broadcast %cst_21 : f32 to vector<1x16xf32>
      %c0_22 = arith.constant 0 : index
      %c0_23 = arith.constant 0 : index
      %50 = vector.load %arg4[%c0_22, %c0_23] : memref<1x16xf32, #tpu.memory_space<vmem>>, vector<1x16xf32>
      tpu.vector_store %arg4[%c0_22, %c0_23], %49 {strides = array<i32>} : memref<1x16xf32, #tpu.memory_space<vmem>>, vector<1x16xf32>,
      %cst_24 = arith.constant 0.000000e+00 : f32
      %51 = vector.broadcast %cst_24 : f32 to vector<1x15xf32>
      %c0_25 = arith.constant 0 : index
      %c0_26 = arith.constant 0 : index
      %52 = vector.load %arg5[%c0_25, %c0_26] : memref<1x15xf32, #tpu.memory_space<vmem>>, vector<1x15xf32>
      tpu.vector_store %arg5[%c0_25, %c0_26], %51 {strides = array<i32>} : memref<1x15xf32, #tpu.memory_space<vmem>>, vector<1x15xf32>,
    } else {
    }
    %c0 = arith.constant 0 : index
    %c0_1 = arith.constant 0 : index
    %c0_2 = arith.constant 0 : index
    %3 = vector.load %arg2[%c0, %c0_1, %c0_2] : memref<1x64x16xf32, #tpu.memory_space<vmem>>, vector<1x64x16xf32>
    %4 = vector.shape_cast %3 : vector<1x64x16xf32> to vector<64x16xf32>
    %5 = vector.extract_strided_slice %4 {offsets = [0, 1], sizes = [64, 15], strides = [1, 1]} : vector<64x16xf32> to vector<64x15xf32>
    %6 = vector.extract_strided_slice %4 {offsets = [0, 0], sizes = [64, 15], strides = [1, 1]} : vector<64x16xf32> to vector<64x15xf32>
    %7 = arith.subf %5, %6 : vector<64x15xf32>
    %8 = math.absf %7 : vector<64x15xf32>
    %c0_3 = arith.constant 0 : index
    %c0_4 = arith.constant 0 : index
    %9 = vector.load %arg5[%c0_3, %c0_4] : memref<1x15xf32, #tpu.memory_space<vmem>>, vector<1x15xf32>
    %cst = arith.constant dense<0.000000e+00> : vector<15xf32>
    %10 = vector.multi_reduction <add>, %8, %cst [0] : vector<64x15xf32> to vector<15xf32>
    %11 = vector.shape_cast %10 : vector<15xf32> to vector<1x15xf32>
    %12 = arith.addf %9, %11 : vector<1x15xf32>
    %c0_5 = arith.constant 0 : index
    %c0_6 = arith.constant 0 : index
    %13 = vector.load %arg5[%c0_5, %c0_6] : memref<1x15xf32, #tpu.memory_space<vmem>>, vector<1x15xf32>
    tpu.vector_store %arg5[%c0_5, %c0_6], %12 {strides = array<i32>} : memref<1x15xf32, #tpu.memory_space<vmem>>, vector<1x15xf32>,
    %14 = vector.extract_strided_slice %4 {offsets = [1, 0], sizes = [63, 16], strides = [1, 1]} : vector<64x16xf32> to vector<63x16xf32>
    %15 = vector.extract_strided_slice %4 {offsets = [0, 0], sizes = [63, 16], strides = [1, 1]} : vector<64x16xf32> to vector<63x16xf32>
    %16 = arith.subf %14, %15 : vector<63x16xf32>
    %17 = math.absf %16 : vector<63x16xf32>
    %18 = tpu.iota {dimensions = array<i32: 0>} : vector<63x16xi32>
    %c1_i32 = arith.constant 1 : i32
    %19 = vector.broadcast %c1_i32 : i32 to vector<63x16xi32>
    %20 = arith.addi %19, %18 : vector<63x16xi32>
    %c16_i32 = arith.constant 16 : i32
    %c0_i32_7 = arith.constant 0 : i32
    %21 = arith.cmpi eq, %c16_i32, %c0_i32_7 : i32
    %c1_i32_8 = arith.constant 1 : i32
    %22 = arith.select %21, %c1_i32_8, %c16_i32 : i32
    %23 = vector.broadcast %22 : i32 to vector<63x16xi32>
    %24 = arith.remsi %20, %23 : vector<63x16xi32>
    %c0_i32_9 = arith.constant 0 : i32
    %25 = vector.broadcast %c0_i32_9 : i32 to vector<63x16xi32>
    %26 = arith.cmpi ne, %24, %25 : vector<63x16xi32>
    %c0_i32_10 = arith.constant 0 : i32
    %27 = vector.broadcast %c0_i32_10 : i32 to vector<63x16xi32>
    %28 = arith.cmpi slt, %24, %27 : vector<63x16xi32>
    %c0_i32_11 = arith.constant 0 : i32
    %29 = arith.cmpi slt, %22, %c0_i32_11 : i32
    %30 = vector.broadcast %29 : i1 to vector<63x16xi1>
    %31 = vector.broadcast %30 : vector<63x16xi1> to vector<63x16xi1>
    %32 = arith.xori %28, %31 : vector<63x16xi1>
    %33 = arith.andi %32, %26 : vector<63x16xi1>
    %34 = vector.broadcast %22 : i32 to vector<63x16xi32>
    %35 = arith.addi %24, %34 : vector<63x16xi32>
    %36 = arith.select %33, %35, %24 : vector<63x16xi1>, vector<63x16xi32>
    %c0_i32_12 = arith.constant 0 : i32
    %37 = vector.broadcast %c0_i32_12 : i32 to vector<63x16xi32>
    %38 = arith.cmpi ne, %36, %37 : vector<63x16xi32>
    %cst_13 = arith.constant 0.000000e+00 : f32
    %39 = vector.broadcast %cst_13 : f32 to vector<63x16xf32>
    %40 = arith.select %38, %17, %39 : vector<63x16xi1>, vector<63x16xf32>
    %c0_14 = arith.constant 0 : index
    %c0_15 = arith.constant 0 : index
    %41 = vector.load %arg4[%c0_14, %c0_15] : memref<1x16xf32, #tpu.memory_space<vmem>>, vector<1x16xf32>
    %cst_16 = arith.constant dense<0.000000e+00> : vector<16xf32>
    %42 = vector.multi_reduction <add>, %40, %cst_16 [0] : vector<63x16xf32> to vector<16xf32>
    %43 = vector.shape_cast %42 : vector<16xf32> to vector<1x16xf32>
    %44 = arith.addf %41, %43 : vector<1x16xf32>
    %c0_17 = arith.constant 0 : index
    %c0_18 = arith.constant 0 : index
    %45 = vector.load %arg4[%c0_17, %c0_18] : memref<1x16xf32, #tpu.memory_space<vmem>>, vector<1x16xf32>
    tpu.vector_store %arg4[%c0_17, %c0_18], %44 {strides = array<i32>} : memref<1x16xf32, #tpu.memory_space<vmem>>, vector<1x16xf32>,
    %c0_i32_19 = arith.constant 0 : i32
    %46 = arith.cmpi eq, %arg1, %c0_i32_19 : i32
    %47 = arith.extui %46 : i1 to i32
    %c0_i32_20 = arith.constant 0 : i32
    %48 = arith.cmpi ne, %47, %c0_i32_20 : i32
    scf.if %48 {
      %c0_21 = arith.constant 0 : index
      %c0_22 = arith.constant 0 : index
      %49 = vector.load %arg4[%c0_21, %c0_22] : memref<1x16xf32, #tpu.memory_space<vmem>>, vector<1x16xf32>
      %50 = vector.shape_cast %49 : vector<1x16xf32> to vector<1x1x16xf32>
      %cst_23 = arith.constant dense<0.000000e+00> : vector<1xf32>
      %51 = vector.multi_reduction <add>, %50, %cst_23 [1, 2] : vector<1x1x16xf32> to vector<1xf32>
      %52 = vector.shape_cast %51 : vector<1xf32> to vector<1x1x1xf32>
      %53 = vector.extract %52[0, 0, 0] : f32 from vector<1x1x1xf32>
      %c0_24 = arith.constant 0 : index
      %c0_25 = arith.constant 0 : index
      %54 = vector.load %arg5[%c0_24, %c0_25] : memref<1x15xf32, #tpu.memory_space<vmem>>, vector<1x15xf32>
      %55 = vector.shape_cast %54 : vector<1x15xf32> to vector<1x1x15xf32>
      %cst_26 = arith.constant dense<0.000000e+00> : vector<1xf32>
      %56 = vector.multi_reduction <add>, %55, %cst_26 [1, 2] : vector<1x1x15xf32> to vector<1xf32>
      %57 = vector.shape_cast %56 : vector<1xf32> to vector<1x1x1xf32>
      %58 = vector.extract %57[0, 0, 0] : f32 from vector<1x1x1xf32>
      %59 = arith.addf %53, %58 : f32
      %60 = vector.broadcast %59 : f32 to vector<8x128xf32>
      %c0_27 = arith.constant 0 : index
      %c0_28 = arith.constant 0 : index
      %c0_29 = arith.constant 0 : index
      %61 = vector.load %arg3[%c0_27, %c0_28, %c0_29] : memref<1x8x128xf32, #tpu.memory_space<vmem>>, vector<1x8x128xf32>
      %62 = vector.shape_cast %61 : vector<1x8x128xf32> to vector<8x128xf32>
      %63 = vector.shape_cast %60 : vector<8x128xf32> to vector<1x8x128xf32>
      tpu.vector_store %arg3[%c0_27, %c0_28, %c0_29], %63 {strides = array<i32>} : memref<1x8x128xf32, #tpu.memory_space<vmem>>, vector<1x8x128xf32>,
    } else {
    }
    return
  }
  func.func @transform_0(%arg0: i32, %arg1: i32) -> (i32, i32, i32) {
    %c0_i32 = arith.constant 0 : i32
    %c0_i32_0 = arith.constant 0 : i32
    return %arg0, %arg1, %c0_i32 : i32, i32, i32
  }
  func.func @transform_1(%arg0: i32, %arg1: i32) -> (i32, i32, i32) {
    %c0_i32 = arith.constant 0 : i32
    %c0_i32_0 = arith.constant 0 : i32
    %c0_i32_1 = arith.constant 0 : i32
    return %arg0, %c0_i32, %c0_i32_0 : i32, i32, i32
  }
}

</mosaic_0001>

<bundles_post_ra>
// kernel: tpu_custom_call.1
= control target key start
LH: loop header
LB: loop body
LE: loop exit
PB: predicated region body
PF: predicated region fallthrough
CT: control target
= control target key end

     0   :  { %6 = vsyncpa [#allocation5], 0  ;;  %s975_s0 = inlined_call_operand.vmem [shape: f32[2,64,16], index: 0, kind: input, shape index: {}]   ;;  %s976_s1 = inlined_call_operand.hbm [shape: f32[2,8,128], index: 1, kind: output, shape index: {}]  }
   0x1   :  { %8 = vsyncpa [#allocation5 + $0x1], 0  ;;  %s765_s6 = smov 0   ;;  %s767_s7 = smov 0  }
   0x2   :  { %s769_s8 = smov 0   ;;  %s771_s9 = smov 0  }
   0x3   :  { %s773_s10 = smov 0   ;;  %s775_s11 = smov 0  }
   0x4 LB: > { %s594_s12 = sadd.s32 4294967295, %s748_s11   ;;  %s595_s13 = sadd.s32 4294967294, %s748_s11   ;;  %s748_s11 = sphi %s775_s11, %s14_s11   ;;  %s744_s10 = sphi %s773_s10, %s985_s10   ;;  %s740_s9 = sphi %s771_s9, %s984_s9   ;;  %s736_s8 = sphi %s769_s8, %s983_s8   ;;  %s732_s7 = sphi %s767_s7, %s982_s7   ;;  %s728_s6 = sphi %s765_s6, %s981_s6  }
   0x5   : > { %s26_s14 = sadd.s32 1, %s744_s10  ;;  %s61_s15 = sadd.s32 1, %s736_s8 }
   0x6   : > { %p28_p0 = scmp.ge.s32.totalorder %s26_s14, 2  ;;  %p71_p1 = scmp.ne.s32.totalorder %s736_s8, %s732_s7 }
   0x7   : > { %p72_p2 = scmp.eq.s32.totalorder %s594_s12, 1  ;;  %p77_p3 = scmp.ne.s32.totalorder %s732_s7, %s728_s6 }
   0x8   : > { %s987_s14 = smov (%p28_p0, %s26_s14), 0  ;;  %p78_p5 = scmp.eq.s32.totalorder %s595_s13, 1 }
   0x9   : > { %p805_p4 = por %p72_p2, %p71_p1  ;;  %s58_s17 = ssub.s32 %s744_s10, %s987_s14 }
   0xa   : > { %p598_p6 = scmp.ge.s32.totalorder %s748_s11, 1  ;;  %p59_p7 = scmp.eq.s32.totalorder %s58_s17, 0 }
   0xb   : > { %p812_p8 = por %p78_p5, %p77_p3  ;;  %p109_p9 = scmp.lt.s32.totalorder %s748_s11, 3 }
   0xc   : > { %s818_s19 = scalar_select %p59_p7, %s736_s8, %s61_s15  }
   0xd   : > { %p110_p10 = pnand %p598_p6, %p109_p9 }
   0xe   : > { %p134_p11 = scmp.lt.s32.totalorder (!%p110_p10), %s740_s9, 1  ;;  %s750_s25 = smov (!%p110_p10), 1   ;;  %vm149_vm0 = vcmask (!%p110_p10), 114688   ;;  %v751_v8 = vmov (!%p110_p10), 0.0   ;;  %v234_v11 = vlaneseq (!%p110_p10)  ;;  %vm251_vm1 = vcmask (!%p110_p10), 1040384  }
   0xf   : > { %113 = sbr.rel (%p110_p10) target bundleno = 528 (0x210), region = 24  ;;  %150 = vst.msk [vmem:[#allocation3] sm:$0x1] (!%p110_p10), %vm149_vm0, %v751_v8  ;;  %vm420_vm2 = vcmask (!%p110_p10), 1046528   ;;  %vm453_vm4 = vcmask (!%p110_p10), 130048   ;;  %vm467_vm8 = vcmask (!%p110_p10), 129024  }
  0x10   : > { %v854_v13 = vshrl.u32 (!%p110_p10), %v234_v11, 7  ;;  %vm208_vm9 = vcmask (!%p110_p10), 130056   ;;  %vm147_vm10 = vcmask (!%p110_p10), 122880   ;;  %s753_s26 = smov (!%p110_p10), 127   ;;  %s130_s27 = sand.u32 (!%p110_p10), 1, %s732_s7  }
  0x11   : > { %148 = vst.msk [vmem:[#allocation2] sm:$0x1] (!%p110_p10), %vm147_vm10, %v751_v8  ;;  %s599_s28 = sshll.u32 (!%p110_p10), %s130_s27, 3  ;;  %s603_s30 = sshll.u32 (!%p110_p10), %s740_s9, 7 }
  0x12   : > { %v293_v16 = vadd.s32 (!%p110_p10), 8, %v854_v13  ;;  %v295_v30 = vadd.s32 (!%p110_p10), 24, %v854_v13  ;;  %v297_v44 = vadd.s32 (!%p110_p10), 40, %v854_v13  ;;  %s132_s2 = scalar_lea.vmem (!%p110_p10), [#allocation4], %s599_s28  ;;  %s928_s15 = scalar_lea.hbm (!%p110_p10), %s976_s1, %s603_s30 }
  0x13   : > { %s521_s3 = sshll.u32 (!%p110_p10), %s132_s2, 4  ;;  %s508_s17 = scalar_lea.sflag (!%p110_p10), [#allocation5], %s130_s27  ;;  %s930_s3 = int_to_ptr.vmem [resolvable:$true] %s521_s3 }
  0x14   : > { %v301_v22 = vadd.s32 (!%p110_p10), 1, %v293_v16  ;;  %v303_v38 = vadd.s32 (!%p110_p10), 1, %v295_v30  ;;  %v305_v57 = vadd.s32 (!%p110_p10), 1, %v297_v44 }
  0x16   : > { %s135_s20 = scalar_select %p134_p11, %s740_s9, 1  ;;  %v319_v28 = vand.u32 15, %v301_v22  ;;  %v333_v49 = vand.u32 15, %v303_v38  ;;  %v347_v11 = vand.u32 15, %v305_v57 }
  0x17   : > { %s754_s9 = smov [#allocation4]  }
  0x18   : > { %s606_s21 = sshll.u32 %s135_s20, 6  ;;  %vm871_vm3 = vcmp.ne.s32.totalorder %v319_v28, 0  ;;  %vm407_vm5 = vcmp.ne.s32.totalorder %v333_v49, 0  ;;  %vm409_vm6 = vcmp.ne.s32.totalorder %v347_v11, 0  ;;  %s670_s20 = scalar_lea.vmem %s930_s3, 128 }
  0x19   : > { %s141_s24 = scalar_lea.vmem %s975_s0, %s606_s21  ;;  %p671_p12 = scmp.ne.s32.totalorder %s930_s3, %s670_s20 }
  0x1a   : > { %v825_v0 = vld [vmem:[%s141_s24] sm:$0xff]  ;;  %v827_v1 = vld [vmem:[%s141_s24 + $0x10] sm:$0xff]  ;;  %v831_v2 = vld [vmem:[%s141_s24 + $0x8] sm:$0xff]  ;;  %s674_s21 = sshll.u32 %s754_s9, 4  ;;  %s675_s21 = int_to_ptr.vmem [resolvable:$false] %s674_s21 }
  0x1b   : > { %167 = vrot.lane.b32.xlu0 %v825_v0, %s750_s25  ;;  %171 = vrot.lane.b32.xlu1 %v827_v1, %s750_s25  ;;  %v833_v3 = vld [vmem:[%s141_s24 + $0x18] sm:$0xff]  ;;  %v837_v4 = vld [vmem:[%s141_s24 + $0x20] sm:$0xff]  ;;  %v252_v9 = vrot.slane %v825_v0, 7  ;;  %v255_v10 = vrot.slane %v827_v1, 7  ;;  %v253_v12 = vrot.slane %v831_v2, 7  ;;  %p672_p13 = pnand %p671_p12, %p805_p4  ;;  %s676_s22 = scalar_lea.vmem %s675_s21, 256 }
  0x1c   : > { %v839_v5 = vld [vmem:[%s141_s24 + $0x28] sm:$0xff]  ;;  %v843_v6 = vld [vmem:[%s141_s24 + $0x30] sm:$0xff]  ;;  %v845_v7 = vld [vmem:[%s141_s24 + $0x38] sm:$0xff]  ;;  %v257_v19 = vrot.slane %v833_v3, 7  ;;  %v259_v20 = vrot.slane %v837_v4, 7  ;;  %p677_p1 = scmp.lt.s32.totalorder %s930_s3, %s675_s21  ;;  %p678_p2 = scmp.lt.s32.totalorder %s676_s22, %s670_s20 }
  0x1d   : > { %v256_v14 = vsel %vm251_vm1, %v253_v12, %v255_v10  ;;  %v254_v15 = vsel %vm251_vm1, %v252_v9, %v253_v12  ;;  %v275_v21 = vsub.f32 %v825_v0, %v252_v9  ;;  %v261_v34 = vrot.slane %v839_v5, 7  ;;  %p673_p0 = pneg %p672_p13 }
  0x1e   : > { %v277_v17 = vsub.f32 %v827_v1, %v256_v14  ;;  %v276_v18 = vsub.f32 %v831_v2, %v254_v15  ;;  %v258_v25 = vsel %vm251_vm1, %v255_v10, %v257_v19  ;;  %v260_v26 = vsel %vm251_vm1, %v257_v19, %v259_v20  ;;  %p679_p3 = por %p678_p2, %p677_p1 }
  0x1f   : > { %169 = vrot.lane.b32.xlu0 %v831_v2, %s750_s25  ;;  %173 = vrot.lane.b32.xlu1 %v833_v3, %s750_s25  ;;  %v283_v27 = vand.u32 2147483647, %v275_v21  ;;  %v278_v29 = vsub.f32 %v833_v3, %v258_v25  ;;  %v279_v33 = vsub.f32 %v837_v4, %v260_v26  ;;  %v263_v35 = vrot.slane %v843_v6, 7 }
  0x20   : > { %v285_v23 = vand.u32 2147483647, %v277_v17  ;;  %v284_v24 = vand.u32 2147483647, %v276_v18  ;;  %v262_v42 = vsel %vm251_vm1, %v259_v20, %v261_v34  ;;  %v265_v52 = vrot.slane %v845_v7, 7  ;;  %p680_p5 = pnand %p679_p3, %p673_p0 }
  0x21   : > { %v421_v36 = vrot.slane %v283_v27, 1  ;;  %v286_v37 = vand.u32 2147483647, %v278_v29  ;;  %v287_v41 = vand.u32 2147483647, %v279_v33  ;;  %v264_v43 = vsel %vm251_vm1, %v261_v34, %v263_v35 }
  0x22   : > { %v424_v31 = vrot.slane %v285_v23, 1  ;;  %v422_v32 = vrot.slane %v284_v24, 1  ;;  %v280_v48 = vsub.f32 %v839_v5, %v262_v42  ;;  %v281_v51 = vsub.f32 %v843_v6, %v264_v43 }
  0x23   : > { %175 = vrot.lane.b32.xlu0 %v837_v4, %s750_s25  ;;  %177 = vrot.lane.b32.xlu1 %v839_v5, %s750_s25  ;;  %v426_v47 = vrot.slane %v286_v37, 1  ;;  %v428_v50 = vrot.slane %v287_v41, 1  ;;  %v266_v60 = vsel %vm251_vm1, %v263_v35, %v265_v52  ;;  %v299_v14 = vadd.s32 56, %v854_v13 }
  0x24   : > { %v425_v40 = vsel %vm420_vm2, %v422_v32, %v424_v31  ;;  %v423_v45 = vsel %vm420_vm2, %v421_v36, %v422_v32  ;;  %v288_v56 = vand.u32 2147483647, %v280_v48  ;;  %v289_v59 = vand.u32 2147483647, %v281_v51 }
  0x25   : > { %v445_v46 = vsel %vm871_vm3, %v425_v40, 0.0  ;;  %v454_v53 = vsel %vm453_vm4, %v423_v45, 0.0  ;;  %v427_v55 = vsel %vm420_vm2, %v424_v31, %v426_v47  ;;  %v429_v58 = vsel %vm420_vm2, %v426_v47, %v428_v50 }
  0x26   : > { %v455_v54 = vsel %vm453_vm4, %v445_v46, 0.0  ;;  %v457_v62 = vsel %vm453_vm4, %v427_v55, 0.0  ;;  %v447_v63 = vsel %vm407_vm5, %v429_v58, 0.0  ;;  %v430_v9 = vrot.slane %v288_v56, 1 }
  0x27   : > { %179 = vrot.lane.b32.xlu0 %v843_v6, %s750_s25  ;;  %181 = vrot.lane.b32.xlu1 %v845_v7, %s750_s25  ;;  %v456_v61 = vadd.f32 %v455_v54, %v454_v53  ;;  %v282_v10 = vsub.f32 %v845_v7, %v266_v60  ;;  %v432_v12 = vrot.slane %v289_v59, 1  ;;  %v459_v16 = vsel %vm453_vm4, %v447_v63, 0.0 }
  0x28   : > { %v431_v17 = vsel %vm420_vm2, %v428_v50, %v430_v9  ;;  %v307_v20 = vadd.s32 1, %v299_v14 }
  0x29   : > { %v458_v15 = vadd.f32 %v457_v62, %v456_v61  ;;  %v290_v18 = vand.u32 2147483647, %v282_v10  ;;  %v433_v19 = vsel %vm420_vm2, %v430_v9, %v432_v12  ;;  %v461_v22 = vsel %vm453_vm4, %v431_v17, 0.0 }
  0x2a   : > { %v449_v23 = vsel %vm409_vm6, %v433_v19, 0.0  ;;  %v361_v25 = vand.u32 15, %v307_v20  ;;  %v752_v20 = vmov 1966171168  }
  0x2b   : > { %v460_v21 = vadd.f32 %v459_v16, %v458_v15  ;;  %v434_v24 = vrot.slane %v290_v18, 1  ;;  %v463_v27 = vsel %vm453_vm4, %v449_v23, 0.0  ;;  %v452_v18 = vld [vmem:[#allocation2] sm:$0x1] }
  0x2c   : > { %vm411_vm7 = vcmp.ne.s32.totalorder %v361_v25, 0 }
  0x2d   : > { %v462_v26 = vadd.f32 %v461_v22, %v460_v21  ;;  %v435_v28 = vsel %vm420_vm2, %v432_v12, %v434_v24  ;;  %v451_v31 = vsel %vm411_vm7, %v434_v24, 0.0  ;;  %v232_v21 = vunpack.c.l.s4 %v752_v20 }
  0x2e   : > { %v465_v30 = vsel %vm453_vm4, %v435_v28, 0.0  ;;  %v468_v33 = vsel %vm467_vm8, %v451_v31, 0.0 }
  0x2f   : > { %v464_v29 = vadd.f32 %v463_v27, %v462_v26  ;;  %v233_v24 = vunpack.c.0.s8 %v232_v21 }
  0x31   : > { %v466_v32 = vadd.f32 %v465_v30, %v464_v29  ;;  %v236_v29 = vsub.s32 %v233_v24, %v854_v13 }
  0x33   : > { %v469_v34 = vadd.f32 %v468_v33, %v466_v32  ;;  %v207_v33 = vld [vmem:[#allocation3] sm:$0x1] }
  0x35   : > { %v470_v38 = vrot.slane %v469_v34, 4 }
  0x37   : > { %v471_v45 = vadd.f32 %v470_v38, %v469_v34 }
  0x39   : > { %v472_v53 = vrot.slane %v471_v45, 2 }
  0x3b   : > { %v473_v10 = vadd.f32 %v472_v53, %v471_v45 }
  0x3d   : > { %v474_v14 = vrot.slane %v473_v10, 1 }
  0x3f   : > { %v475_v17 = vadd.f32 %v474_v14, %v473_v10 }
  0x8d   : > { %v168_v35 = vpop.permute.xlu0 %167  ;;  %v172_v36 = vpop.permute.xlu1 %171 }
  0x8e   : > { %v191_v37 = vsub.f32 %v825_v0, %v168_v35  ;;  %v193_v39 = vsub.f32 %v827_v1, %v172_v36 }
  0x90   : > { %v199_v42 = vand.u32 2147483647, %v191_v37  ;;  %v201_v46 = vand.u32 2147483647, %v193_v39 }
  0x91   : > { %v170_v40 = vpop.permute.xlu0 %169  ;;  %v174_v41 = vpop.permute.xlu1 %173 }
  0x92   : > { %v192_v43 = vsub.f32 %v831_v2, %v170_v40  ;;  %v194_v44 = vsub.f32 %v833_v3, %v174_v41  ;;  %v209_v51 = vsel %vm208_vm9, %v199_v42, 0.0  ;;  %v212_v2 = vsel %vm208_vm9, %v201_v46, 0.0 }
  0x94   : > { %v200_v47 = vand.u32 2147483647, %v192_v43  ;;  %v202_v48 = vand.u32 2147483647, %v194_v44 }
  0x95   : > { %v176_v49 = vpop.permute.xlu0 %175  ;;  %v178_v50 = vpop.permute.xlu1 %177 }
  0x96   : > { %v210_v0 = vsel %vm208_vm9, %v200_v47, 0.0  ;;  %v195_v1 = vsub.f32 %v837_v4, %v176_v49  ;;  %v196_v52 = vsub.f32 %v839_v5, %v178_v50  ;;  %v214_v3 = vsel %vm208_vm9, %v202_v48, 0.0 }
  0x97   : > { %v211_v54 = vadd.f32 %v210_v0, %v209_v51 }
  0x98   : > { %v203_v55 = vand.u32 2147483647, %v195_v1  ;;  %v204_v56 = vand.u32 2147483647, %v196_v52 }
  0x99   : > { %v213_v57 = vadd.f32 %v212_v2, %v211_v54  ;;  %v180_v58 = vpop.permute.xlu0 %179  ;;  %v182_v59 = vpop.permute.xlu1 %181 }
  0x9a   : > { %v216_v60 = vsel %vm208_vm9, %v203_v55, 0.0  ;;  %v197_v61 = vsub.f32 %v843_v6, %v180_v58  ;;  %v198_v4 = vsub.f32 %v845_v7, %v182_v59  ;;  %v218_v62 = vsel %vm208_vm9, %v204_v56, 0.0 }
  0x9b   : > { %v215_v5 = vadd.f32 %v214_v3, %v213_v57  ;;  %v476_v7 = vadd.f32 %v475_v17, %v452_v18 }
  0x9c   : > { %v205_v63 = vand.u32 2147483647, %v197_v61  ;;  %v206_v9 = vand.u32 2147483647, %v198_v4 }
  0x9d   : > { %v217_v11 = vadd.f32 %v216_v60, %v215_v5  ;;  %478 = vst.msk [vmem:[#allocation2] sm:$0x1] %vm147_vm10, %v476_v7 }
  0x9e   : > { %v220_v12 = vsel %vm208_vm9, %v205_v63, 0.0  ;;  %v222_v16 = vsel %vm208_vm9, %v206_v9, 0.0 }
  0x9f   : > { %v219_v15 = vadd.f32 %v218_v62, %v217_v11 }
  0xa1   : > { %v221_v6 = vadd.f32 %v220_v12, %v219_v15 }
  0xa3   : > { %v223_v19 = vadd.f32 %v222_v16, %v221_v6 }
  0xa4   : > { %v482_v26 = vld [vmem:[#allocation2] sm:$0x1] }
  0xa5   : > { %v224_v8 = vrot.slane %v223_v19, 4  ;;  %v483_v27 = vsel %vm147_vm10, %v482_v26, 0.0 }
  0xa6   : > { %484 = vadd.xlane.f32.xlu1 %v483_v27 }
  0xa7   : > { %v225_v22 = vadd.f32 %v224_v8, %v223_v19 }
  0xa9   : > { %v226_v23 = vrot.slane %v225_v22, 2 }
  0xab   : > { %v227_v25 = vadd.f32 %v226_v23, %v225_v22 }
  0xad   : > { %v228_v28 = vrot.slane %v227_v25, 1 }
  0xaf   : > { %v229_v30 = vadd.f32 %v228_v28, %v227_v25 }
  0xb1   : > { %v237_v31 = vrot.slane %v229_v30, %v236_v29 }
  0xb3   : > { %v244_v32 = vrot.slane %v237_v31, %v236_v29 }
  0xb5   : > { %245 = vrot.lane.b32.xlu0 %v244_v32, %s753_s26 }
 0x127   : > { %v246_v34 = vpop.permute.xlu0 %245 }
 0x128   : > { %v248_v35 = vadd.f32 %v246_v34, %v207_v33 }
 0x12a   : > { %250 = vst.msk [vmem:[#allocation3] sm:$0x1] %vm149_vm0, %v248_v35 }
 0x131   : > { %v493_v36 = vld [vmem:[#allocation3] sm:$0x1] }
 0x132   : > { %v494_v37 = vsel %vm149_vm0, %v493_v36, 0.0 }
 0x133   : > { %495 = vadd.xlane.f32.xlu0 %v494_v37  ;;  %v485_v38 = vpop.xlane.xlu1 %484 }
 0x134   : > { %v486_v39 = vrot.slane %v485_v38, 4 }
 0x136   : > { %v487_v40 = vadd.f32 %v486_v39, %v485_v38 }
 0x138   : > { %v488_v13 = vrot.slane %v487_v40, 2 }
 0x13a   : > { %v489_v41 = vadd.f32 %v488_v13, %v487_v40 }
 0x13c   : > { %v490_v42 = vrot.slane %v489_v41, 1 }
 0x13e   : > { %v491_v43 = vadd.f32 %v490_v42, %v489_v41 }
 0x140   : > { %607 = vpush %v491_v43 }
 0x171   : > { %s608_s29 = spop %607 }
 0x1c0   : > { %v496_v44 = vpop.xlane.xlu0 %495 }
 0x1c1   : > { %v497_v45 = vrot.slane %v496_v44, 4 }
 0x1c3   : > { %v498_v46 = vadd.f32 %v497_v45, %v496_v44 }
 0x1c5   : > { %v499_v47 = vrot.slane %v498_v46, 2 }
 0x1c7   : > { %v500_v48 = vadd.f32 %v499_v47, %v498_v46 }
 0x1c9   : > { %v501_v49 = vrot.slane %v500_v48, 1 }
 0x1cb   : > { %v502_v50 = vadd.f32 %v501_v49, %v500_v48 }
 0x1cd   : > { %609 = vpush %v502_v50 }
 0x1fe   : > { %s610_s4 = spop %609 }
 0x1ff   : > { %s504_s5 = sadd.f32 %s610_s4, %s608_s29 }
 0x201   : > { %v505_v51 = vstv %s504_s5 }
 0x202   : > { %506 = vst [vmem:[%s132_s2] sm:$0xff] %v505_v51 }
 0x203   : > { %683 = shalt.err (!%p680_p5)
}
 0x204   : > { %s684_s23 = scalar_lea.hbm %s928_s15, 128  ;;  %s688_s26 = scalar_lea.hbm %s976_s1, 256 }
 0x205   : > { %p685_p6 = scmp.ne.s32.totalorder %s928_s15, %s684_s23  ;;  %p689_p10 = scmp.lt.u32.totalorder %s928_s15, %s976_s1 }
 0x206   : > { %p690_p11 = scmp.lt.u32.totalorder %s688_s26, %s684_s23  ;;  %p692_p13 = scmp.lt.u32.totalorder %s684_s23, %s928_s15 }
 0x207   : > { %p686_p7 = pnand %p685_p6, %p805_p4 }
 0x208   : > { %p691_p12 = por %p690_p11, %p689_p10 }
 0x209   : > { %p687_p9 = pneg %p686_p7 }
 0x20a   : > { %p693_p0 = por %p692_p13, %p691_p12 }
 0x20c   : > { %p694_p1 = pnand %p693_p0, %p687_p9 }
 0x20e   : > { %697 = shalt.err (!%p694_p1)
}
 0x20f   : > { %611 = dma.vmem_to_hbm [thread:$0]  (%p805_p4), %s930_s3, 128, %s928_s15, %s508_s17  }
 0x210 PF: > { %p617_p2 = scmp.ge.s32.totalorder %s748_s11, 2  ;;  %s533_s29 = sand.u32 1, %s728_s6  }
 0x211   : > { %s534_s30 = scalar_lea.sflag [#allocation5], %s533_s29 }
 0x212   : > { %p614_p3 = pnand %p617_p2, %p812_p8 }
 0x214   : > { %723 = dma.done.wait (!%p614_p3), %s534_s30, 128  }
 0x215   : > { %725 = vsyncadd (!%p614_p3), %s534_s30, 4294967168  ;;  %s14_s11 = sadd.s32 1, %s748_s11   ;;  %s981_s6 = smov %s732_s7 }
 0x216   : > { %p11_p5 = scmp.ge.s32.totalorder %s14_s11, 4   ;;  %s982_s7 = smov %s736_s8 }
 0x217   : > { %s983_s8 = smov %s818_s19  ;;  %s984_s9 = smov %s744_s10 }
 0x218   : > { %s985_s10 = smov %s987_s14  ;;  %13 = sbr.rel (!%p11_p5) target bundleno = 4 (0x4), region = 67 }
 0x21f   :  { %539 = vsyncpa [#allocation5], 1 }
 0x220   :  { %541 = vsyncpa [#allocation5 + $0x1], 1 }

</bundles_post_ra>
